<compile_context>
chip_gen: v6e
topology: v6e:2x2x1
jax: 0.10.0
libtpu: 0.0.40
codegen_flags: <defaults>
</compile_context>

<pallas_src>
import functools
import math

import numpy as np
import jax
import jax.numpy as jnp
from jax import lax
from jax.experimental import pallas as pl
from jax.experimental.pallas import tpu as pltpu


def _build_avg_matrix(seq_len: int, kernel_size: int) -> jnp.ndarray:
    """(S, S) matrix s.t. W @ x == AvgPool1d(k, stride=1) of replicate-padded x."""
    S, k = seq_len, kernel_size
    pad_front = math.ceil((k - 1) / 2)
    # padded position p -> source index (replicate padding at both ends)
    idx = np.clip(np.arange(S + k - 1) - pad_front, 0, S - 1)
    onehot = np.eye(S, dtype=np.float32)[idx]                       # (S+k-1, S)
    cs = np.concatenate(
        [np.zeros((1, S), np.float32), np.cumsum(onehot, axis=0)], axis=0
    )                                                               # (S+k, S)
    W = (cs[k:] - cs[:-k]) / float(k)                               # (S, S), rows sum to 1
    return jnp.asarray(W, jnp.float32)


def _vmem_limits() -> tuple[int, int]:
    """Return (tile_sizing_budget, vmem_limit_bytes) derived from the chip's VMEM."""
    phys = 64 << 20  # conservative fallback (v7x physical per-TC VMEM)
    try:
        info = pltpu.get_tpu_info()
        phys = int(getattr(info, "vmem_capacity_bytes", phys)) or phys
    except Exception:
        pass
    # Request ~3/4 of physical as scoped VMEM (capped), size tiles against ~80% of it
    # to leave headroom for compiler-internal scratch.
    limit = min((phys * 3) // 4, 96 << 20)
    budget = (limit * 4) // 5
    return budget, limit


def _choose_tiles(B: int, S: int, D: int, io_itemsize: int, op_itemsize: int,
                  budget: int) -> tuple[int, int]:
    """Pick (Bt, Dt): grow the batch tile first, split D only when one batch element
    with the full feature dim no longer fits the VMEM budget."""
    # W (S, S), double-buffered by the pipeline.
    fixed = 2 * S * S * op_itemsize
    # Per (batch, feature) column of a block:
    #   x/res/mean blocks, double-buffered  -> 3 * 2 * io_itemsize per element
    #   in-kernel f32 dot result + operand  -> ~2 * 4 per element (conservative; the
    #   fori_loop actually bounds their live range to one batch row at a time).
    per_col = S * (3 * 2 * io_itemsize + 2 * 4)
    avail = max(budget - fixed, per_col)

    # Candidate feature tiles: whole D first, then lane-aligned (multiple-of-128)
    # divisors so blocks stay lane-dense and the MXU N dimension stays >= 128.
    dt_candidates = [D]
    if D > 128 and D % 128 == 0:
        dt_candidates += [dt for dt in range(D - 128, 0, -128) if D % dt == 0]

    for dt in dt_candidates:
        for bt in range(B, 0, -1):          # largest batch tile dividing B that fits
            if B % bt == 0 and bt * dt * per_col <= avail:
                return bt, dt
    return 1, dt_candidates[-1]             # best effort for extreme shapes


def _decomp_kernel(x_ref, w_ref, res_ref, mean_ref, *, bt: int):
    # w: (S, S) averaging matrix in the MXU operand dtype (bf16 for bf16 inputs).
    w = w_ref[...]

    def body(b, carry):
        x = x_ref[b]                                               # (S, Dt), I/O dtype
        xb = x if x.dtype == w.dtype else x.astype(w.dtype)
        mean = jnp.dot(w, xb, preferred_element_type=jnp.float32)  # MXU, f32 accumulate
        mean_q = mean.astype(mean_ref.dtype)
        mean_ref[b] = mean_q
        # Subtract in the I/O dtype (matches PyTorch: res = x - moving_mean in x.dtype).
        res_ref[b] = (x - mean_q).astype(res_ref.dtype)
        return carry

    # fori_loop bounds f32 live ranges and avoids compile blowup for large Bt;
    # fully unroll short trip-counts so the LLO scheduler can interleave DMAs/compute.
    lax.fori_loop(0, bt, body, None, unroll=bt <= 8)


def series_decomp(x: jnp.ndarray, kernel_size: int):
    """x: (B, S, D).  Returns (res, moving_mean), both (B, S, D)."""
    B, S, D = x.shape
    k = int(kernel_size)

    # Native bf16 MXU operands when the input is bf16 (f32 accumulation regardless).
    op_dtype = jnp.bfloat16 if x.dtype == jnp.bfloat16 else jnp.float32
    W = _build_avg_matrix(S, k).astype(op_dtype)

    budget, vmem_limit = _vmem_limits()
    Bt, Dt = _choose_tiles(B, S, D, x.dtype.itemsize, jnp.dtype(op_dtype).itemsize,
                           budget)
    grid = (B // Bt, D // Dt)

    # Note: for D < 128 the output stores are partially masked (sub-lane-width last
    # dim); making them lane-dense would require wrapper-side transposes that add more
    # HBM traffic than they save on this memory-bound op, so blocks keep (Bt, S, Dt).
    seq_spec = pl.BlockSpec((Bt, S, Dt), lambda i, j: (i, 0, j))
    w_spec = pl.BlockSpec((S, S), lambda i, j: (0, 0))  # constant block -> DMA'd once

    kernel = functools.partial(_decomp_kernel, bt=Bt)

    res, mean = pl.pallas_call(
        kernel,
        out_shape=(
            jax.ShapeDtypeStruct((B, S, D), x.dtype),
            jax.ShapeDtypeStruct((B, S, D), x.dtype),
        ),
        grid_spec=pltpu.PrefetchScalarGridSpec(
            num_scalar_prefetch=0,
            grid=grid,
            in_specs=[seq_spec, w_spec],
            out_specs=[seq_spec, seq_spec],
        ),
        compiler_params=pltpu.CompilerParams(
            dimension_semantics=("parallel", "parallel"),
            vmem_limit_bytes=int(vmem_limit),
        ),
    )(x, W)
    return res, mean


def _reference(x, kernel_size):
    """Pure-JAX mirror of the PyTorch forward (moving_avg + series_decomp)."""
    k = int(kernel_size)
    pad_front = math.ceil((k - 1) / 2)
    pad_end = (k - 1) // 2
    front = jnp.repeat(x[:, :1, :], pad_front, axis=1)
    end = jnp.repeat(x[:, -1:, :], pad_end, axis=1)
    xp = jnp.concatenate([front, x, end], axis=1)                   # (B, S+k-1, D)
    cs = jnp.cumsum(xp.astype(jnp.float32), axis=1)
    cs = jnp.concatenate([jnp.zeros_like(cs[:, :1, :]), cs], axis=1)
    mean = ((cs[:, k:, :] - cs[:, :-k, :]) / k).astype(x.dtype)     # (B, S, D)
    return x - mean, mean


if __name__ == "__main__":
    key = jax.random.PRNGKey(0)

    # Primary config: lane-dense feature dim (D=128), whole problem in one grid step.
    B, S, D = 4, 32, 128
    kernel_size = 25
    x = jax.random.normal(key, (B, S, D), jnp.float32)

    res, mean = series_decomp(x, kernel_size)
    jax.block_until_ready((res, mean))

    res_ref, mean_ref = _reference(x, kernel_size)
    assert jnp.allclose(mean, mean_ref, atol=1e-4, rtol=1e-4), "moving_mean mismatch"
    assert jnp.allclose(res, res_ref, atol=1e-4, rtol=1e-4), "residual mismatch"

    # Secondary config: odd batch, small/even kernel size, narrow feature dim.
    B2, S2, D2, k2 = 3, 8, 32, 4
    x2 = jax.random.normal(jax.random.fold_in(key, 1), (B2, S2, D2), jnp.float32)
    res2, mean2 = series_decomp(x2, k2)
    jax.block_until_ready((res2, mean2))
    res2_ref, mean2_ref = _reference(x2, k2)
    assert jnp.allclose(mean2, mean2_ref, atol=1e-4, rtol=1e-4), "moving_mean mismatch (cfg2)"
    assert jnp.allclose(res2, res2_ref, atol=1e-4, rtol=1e-4), "residual mismatch (cfg2)"

    print("KERNEL_OK")
</pallas_src>

<mosaic_0001>
module attributes {stable_mosaic.version = 11 : i64} {
  func.func @_decomp_kernel(%arg0: i32, %arg1: i32, %arg2: memref<4x32x128xf32, #tpu.memory_space<vmem>>, %arg3: memref<32x32xf32, #tpu.memory_space<vmem>>, %arg4: memref<4x32x128xf32, #tpu.memory_space<vmem>>, %arg5: memref<4x32x128xf32, #tpu.memory_space<vmem>>) attributes {dimension_semantics = [#tpu.dimension_semantics<parallel>, #tpu.dimension_semantics<parallel>], iteration_bounds = array<i64: 1, 1>, scalar_prefetch = 0 : i64, scratch_operands = 0 : i64, tpu.core_type = #tpu.core_type<tc>, window_params = [{transform_indices = @transform_0, window_bounds = array<i64: 4, 32, 128>}, {pipeline_mode = #tpu.pipeline_mode<synchronous>, transform_indices = @transform_1, window_bounds = array<i64: 32, 32>}, {transform_indices = @transform_2, window_bounds = array<i64: 4, 32, 128>}, {transform_indices = @transform_3, window_bounds = array<i64: 4, 32, 128>}]} {
    %c0 = arith.constant 0 : index
    %c0_0 = arith.constant 0 : index
    %0 = vector.load %arg3[%c0, %c0_0] : memref<32x32xf32, #tpu.memory_space<vmem>>, vector<32x32xf32>
    %c0_i32 = arith.constant 0 : i32
    %1 = arith.index_cast %c0_i32 : i32 to index
    %c0_1 = arith.constant 0 : index
    %c0_2 = arith.constant 0 : index
    %2 = vector.load %arg2[%1, %c0_1, %c0_2] : memref<4x32x128xf32, #tpu.memory_space<vmem>>, vector<1x32x128xf32>
    %3 = vector.shape_cast %2 : vector<1x32x128xf32> to vector<32x128xf32>
    %cst = arith.constant dense<0.000000e+00> : vector<32x128xf32>
    %4 = tpu.matmul %0, %3, %cst {dimension_numbers = #tpu.dot_dimension_numbers<[1], [0], [0], [1], [0, 0, 1, 1], [], []>} : vector<32x32xf32>, vector<32x128xf32>, vector<32x128xf32> -> vector<32x128xf32>
    %5 = arith.index_cast %c0_i32 : i32 to index
    %c0_3 = arith.constant 0 : index
    %c0_4 = arith.constant 0 : index
    %6 = vector.load %arg5[%5, %c0_3, %c0_4] : memref<4x32x128xf32, #tpu.memory_space<vmem>>, vector<1x32x128xf32>
    %7 = vector.shape_cast %6 : vector<1x32x128xf32> to vector<32x128xf32>
    %8 = vector.shape_cast %4 : vector<32x128xf32> to vector<1x32x128xf32>
    tpu.vector_store %arg5[%5, %c0_3, %c0_4], %8 {strides = array<i32>} : memref<4x32x128xf32, #tpu.memory_space<vmem>>, vector<1x32x128xf32>,
    %9 = arith.subf %3, %4 : vector<32x128xf32>
    %10 = arith.index_cast %c0_i32 : i32 to index
    %c0_5 = arith.constant 0 : index
    %c0_6 = arith.constant 0 : index
    %11 = vector.load %arg4[%10, %c0_5, %c0_6] : memref<4x32x128xf32, #tpu.memory_space<vmem>>, vector<1x32x128xf32>
    %12 = vector.shape_cast %11 : vector<1x32x128xf32> to vector<32x128xf32>
    %13 = vector.shape_cast %9 : vector<32x128xf32> to vector<1x32x128xf32>
    tpu.vector_store %arg4[%10, %c0_5, %c0_6], %13 {strides = array<i32>} : memref<4x32x128xf32, #tpu.memory_space<vmem>>, vector<1x32x128xf32>,
    %c1_i32 = arith.constant 1 : i32
    %14 = arith.index_cast %c1_i32 : i32 to index
    %c0_7 = arith.constant 0 : index
    %c0_8 = arith.constant 0 : index
    %15 = vector.load %arg2[%14, %c0_7, %c0_8] : memref<4x32x128xf32, #tpu.memory_space<vmem>>, vector<1x32x128xf32>
    %16 = vector.shape_cast %15 : vector<1x32x128xf32> to vector<32x128xf32>
    %cst_9 = arith.constant dense<0.000000e+00> : vector<32x128xf32>
    %17 = tpu.matmul %0, %16, %cst_9 {dimension_numbers = #tpu.dot_dimension_numbers<[1], [0], [0], [1], [0, 0, 1, 1], [], []>} : vector<32x32xf32>, vector<32x128xf32>, vector<32x128xf32> -> vector<32x128xf32>
    %18 = arith.index_cast %c1_i32 : i32 to index
    %c0_10 = arith.constant 0 : index
    %c0_11 = arith.constant 0 : index
    %19 = vector.load %arg5[%18, %c0_10, %c0_11] : memref<4x32x128xf32, #tpu.memory_space<vmem>>, vector<1x32x128xf32>
    %20 = vector.shape_cast %19 : vector<1x32x128xf32> to vector<32x128xf32>
    %21 = vector.shape_cast %17 : vector<32x128xf32> to vector<1x32x128xf32>
    tpu.vector_store %arg5[%18, %c0_10, %c0_11], %21 {strides = array<i32>} : memref<4x32x128xf32, #tpu.memory_space<vmem>>, vector<1x32x128xf32>,
    %22 = arith.subf %16, %17 : vector<32x128xf32>
    %23 = arith.index_cast %c1_i32 : i32 to index
    %c0_12 = arith.constant 0 : index
    %c0_13 = arith.constant 0 : index
    %24 = vector.load %arg4[%23, %c0_12, %c0_13] : memref<4x32x128xf32, #tpu.memory_space<vmem>>, vector<1x32x128xf32>
    %25 = vector.shape_cast %24 : vector<1x32x128xf32> to vector<32x128xf32>
    %26 = vector.shape_cast %22 : vector<32x128xf32> to vector<1x32x128xf32>
    tpu.vector_store %arg4[%23, %c0_12, %c0_13], %26 {strides = array<i32>} : memref<4x32x128xf32, #tpu.memory_space<vmem>>, vector<1x32x128xf32>,
    %c2_i32 = arith.constant 2 : i32
    %27 = arith.index_cast %c2_i32 : i32 to index
    %c0_14 = arith.constant 0 : index
    %c0_15 = arith.constant 0 : index
    %28 = vector.load %arg2[%27, %c0_14, %c0_15] : memref<4x32x128xf32, #tpu.memory_space<vmem>>, vector<1x32x128xf32>
    %29 = vector.shape_cast %28 : vector<1x32x128xf32> to vector<32x128xf32>
    %cst_16 = arith.constant dense<0.000000e+00> : vector<32x128xf32>
    %30 = tpu.matmul %0, %29, %cst_16 {dimension_numbers = #tpu.dot_dimension_numbers<[1], [0], [0], [1], [0, 0, 1, 1], [], []>} : vector<32x32xf32>, vector<32x128xf32>, vector<32x128xf32> -> vector<32x128xf32>
    %31 = arith.index_cast %c2_i32 : i32 to index
    %c0_17 = arith.constant 0 : index
    %c0_18 = arith.constant 0 : index
    %32 = vector.load %arg5[%31, %c0_17, %c0_18] : memref<4x32x128xf32, #tpu.memory_space<vmem>>, vector<1x32x128xf32>
    %33 = vector.shape_cast %32 : vector<1x32x128xf32> to vector<32x128xf32>
    %34 = vector.shape_cast %30 : vector<32x128xf32> to vector<1x32x128xf32>
    tpu.vector_store %arg5[%31, %c0_17, %c0_18], %34 {strides = array<i32>} : memref<4x32x128xf32, #tpu.memory_space<vmem>>, vector<1x32x128xf32>,
    %35 = arith.subf %29, %30 : vector<32x128xf32>
    %36 = arith.index_cast %c2_i32 : i32 to index
    %c0_19 = arith.constant 0 : index
    %c0_20 = arith.constant 0 : index
    %37 = vector.load %arg4[%36, %c0_19, %c0_20] : memref<4x32x128xf32, #tpu.memory_space<vmem>>, vector<1x32x128xf32>
    %38 = vector.shape_cast %37 : vector<1x32x128xf32> to vector<32x128xf32>
    %39 = vector.shape_cast %35 : vector<32x128xf32> to vector<1x32x128xf32>
    tpu.vector_store %arg4[%36, %c0_19, %c0_20], %39 {strides = array<i32>} : memref<4x32x128xf32, #tpu.memory_space<vmem>>, vector<1x32x128xf32>,
    %c3_i32 = arith.constant 3 : i32
    %40 = arith.index_cast %c3_i32 : i32 to index
    %c0_21 = arith.constant 0 : index
    %c0_22 = arith.constant 0 : index
    %41 = vector.load %arg2[%40, %c0_21, %c0_22] : memref<4x32x128xf32, #tpu.memory_space<vmem>>, vector<1x32x128xf32>
    %42 = vector.shape_cast %41 : vector<1x32x128xf32> to vector<32x128xf32>
    %cst_23 = arith.constant dense<0.000000e+00> : vector<32x128xf32>
    %43 = tpu.matmul %0, %42, %cst_23 {dimension_numbers = #tpu.dot_dimension_numbers<[1], [0], [0], [1], [0, 0, 1, 1], [], []>} : vector<32x32xf32>, vector<32x128xf32>, vector<32x128xf32> -> vector<32x128xf32>
    %44 = arith.index_cast %c3_i32 : i32 to index
    %c0_24 = arith.constant 0 : index
    %c0_25 = arith.constant 0 : index
    %45 = vector.load %arg5[%44, %c0_24, %c0_25] : memref<4x32x128xf32, #tpu.memory_space<vmem>>, vector<1x32x128xf32>
    %46 = vector.shape_cast %45 : vector<1x32x128xf32> to vector<32x128xf32>
    %47 = vector.shape_cast %43 : vector<32x128xf32> to vector<1x32x128xf32>
    tpu.vector_store %arg5[%44, %c0_24, %c0_25], %47 {strides = array<i32>} : memref<4x32x128xf32, #tpu.memory_space<vmem>>, vector<1x32x128xf32>,
    %48 = arith.subf %42, %43 : vector<32x128xf32>
    %49 = arith.index_cast %c3_i32 : i32 to index
    %c0_26 = arith.constant 0 : index
    %c0_27 = arith.constant 0 : index
    %50 = vector.load %arg4[%49, %c0_26, %c0_27] : memref<4x32x128xf32, #tpu.memory_space<vmem>>, vector<1x32x128xf32>
    %51 = vector.shape_cast %50 : vector<1x32x128xf32> to vector<32x128xf32>
    %52 = vector.shape_cast %48 : vector<32x128xf32> to vector<1x32x128xf32>
    tpu.vector_store %arg4[%49, %c0_26, %c0_27], %52 {strides = array<i32>} : memref<4x32x128xf32, #tpu.memory_space<vmem>>, vector<1x32x128xf32>,
    %c4_i32 = arith.constant 4 : i32
    return
  }
  func.func @transform_0(%arg0: i32, %arg1: i32) -> (i32, i32, i32) {
    %c0_i32 = arith.constant 0 : i32
    %c0_i32_0 = arith.constant 0 : i32
    return %arg0, %c0_i32, %arg1 : i32, i32, i32
  }
  func.func @transform_1(%arg0: i32, %arg1: i32) -> (i32, i32) {
    %c0_i32 = arith.constant 0 : i32
    %c0_i32_0 = arith.constant 0 : i32
    %c0_i32_1 = arith.constant 0 : i32
    return %c0_i32, %c0_i32_0 : i32, i32
  }
  func.func @transform_2(%arg0: i32, %arg1: i32) -> (i32, i32, i32) {
    %c0_i32 = arith.constant 0 : i32
    %c0_i32_0 = arith.constant 0 : i32
    return %arg0, %c0_i32, %arg1 : i32, i32, i32
  }
  func.func @transform_3(%arg0: i32, %arg1: i32) -> (i32, i32, i32) {
    %c0_i32 = arith.constant 0 : i32
    %c0_i32_0 = arith.constant 0 : i32
    return %arg0, %c0_i32, %arg1 : i32, i32, i32
  }
}

</mosaic_0001>

<bundles_post_ra>
// kernel: tpu_custom_call.1
= control target key start
LH: loop header
LB: loop body
LE: loop exit
PB: predicated region body
PF: predicated region fallthrough
CT: control target
= control target key end

     0   :  { %9 = vsyncpa [#allocation3], 0  ;;  %s851_s0 = inlined_call_operand.hbm [shape: f32[4,32,128], index: 0, kind: input, shape index: {}]   ;;  %s852_s1 = inlined_call_operand.hbm [shape: f32[32,32], index: 1, kind: input, shape index: {}]   ;;  %s853_s2 = inlined_call_operand.hbm [shape: f32[4,32,128], index: 2, kind: output, shape index: {0}]   ;;  %s854_s3 = inlined_call_operand.hbm [shape: f32[4,32,128], index: 3, kind: output, shape index: {1}]  }
   0x1   :  { %10 = vsyncpa [#allocation6], 0 }
   0x2   :  { %11 = vsyncpa [#allocation4], 0 }
   0x3   :  { %12 = vsyncpa [#allocation9], 0  ;;  %s705_s12 = smov [#allocation2]  }
   0x4   :  { %s18_s13 = sshll.u32 %s705_s12, 4  ;;  %s19_s13 = int_to_ptr.vmem [resolvable:$true] %s18_s13 }
   0x5   :  { %s625_s14 = scalar_lea.vmem %s19_s13, 2048  ;;  %p630_p1 = scmp.lt.s32.totalorder %s19_s13, %s19_s13 }
   0x6   :  { %p626_p0 = scmp.ne.s32.totalorder %s19_s13, %s625_s14  ;;  %p631_p2 = scmp.lt.s32.totalorder %s625_s14, %s625_s14 }
   0x8   :  { %p632_p3 = por %p631_p2, %p630_p1 }
   0xa   :  { %p633_p4 = pnand %p632_p3, %p626_p0 }
   0xc   :  { %636 = shalt.err (!%p633_p4)
}
   0xd   :  { %s706_s15 = smov 128   ;;  %s707_s16 = smov 8  }
   0xe   :  { %24 = dma.hbm_to_vmem [thread:$0]  %s851_s0, 2048, %s19_s13, [#allocation3], %s706_s15, %s706_s15, %s707_s16  }
   0xf   :  { %s708_s19 = smov [#allocation5]  }
  0x10   :  { %s30_s20 = sshll.u32 %s708_s19, 4  ;;  %s31_s20 = int_to_ptr.vmem [resolvable:$true] %s30_s20 }
  0x11   :  { %s645_s21 = scalar_lea.vmem %s31_s20, 512  ;;  %p650_p6 = scmp.lt.s32.totalorder %s31_s20, %s31_s20 }
  0x12   :  { %p646_p5 = scmp.ne.s32.totalorder %s31_s20, %s645_s21  ;;  %p651_p7 = scmp.lt.s32.totalorder %s645_s21, %s645_s21 }
  0x14   :  { %p652_p8 = por %p651_p7, %p650_p6 }
  0x16   :  { %p653_p9 = pnand %p652_p8, %p646_p5 }
  0x18   :  { %656 = shalt.err (!%p653_p9)
}
  0x19   :  { %36 = dma.hbm_to_vmem [thread:$0]  %s852_s1, 512, %s31_s20, [#allocation6], %s706_s15, %s706_s15, %s707_s16  }
  0x1a   :  { %697 = dma.done.wait [#allocation3], 2048  }
  0x1b   :  { %698 = vsyncadd [#allocation3], 4294965248 }
  0x1c   :  { %699 = dma.done.wait [#allocation6], 512  }
  0x1d   :  { %700 = vsyncadd [#allocation6], 4294966784  ;;  %v743_v0 = vld [vmem:[#allocation2 + $0x18] sm:$0xff]  ;;  %v747_v2 = vld [vmem:[#allocation2 + $0x10] sm:$0xff]  ;;  %vm51_vm0 = vcmask 261120   ;;  %s709_s0 = smov [#allocation8]  }
  0x1e   :  { %v745_v1 = vld [vmem:[#allocation2 + $0x38] sm:$0xff]  ;;  %555 = vmatprep.subr.mxu0 %v743_v0  ;;  %v751_v3 = vld [vmem:[#allocation2 + $0x30] sm:$0xff]  ;;  %v755_v4 = vld [vmem:[#allocation2 + $0x8] sm:$0xff]  ;;  %s490_s1 = sshll.u32 %s709_s0, 4  ;;  %s710_s24 = smov [#allocation7]   ;;  %s491_s1 = int_to_ptr.vmem [resolvable:$true] %s490_s1 }
  0x1f   :  { %569 = vmatprep.subr.mxu1 %v745_v1  ;;  %556 = vmatpush3.msra.mxu0 %v743_v0  ;;  %v757_v5 = vld [vmem:[#allocation2 + $0x28] sm:$0xff]  ;;  %v763_v6 = vld [vmem:[#allocation2] sm:$0xff]  ;;  %v775_v10 = vld [vmem:[#allocation2 + $0x58] sm:$0xff]  ;;  %s478_s25 = sshll.u32 %s710_s24, 4  ;;  %s657_s26 = scalar_lea.vmem %s491_s1, 2048  ;;  %s479_s25 = int_to_ptr.vmem [resolvable:$true] %s478_s25 }
  0x20   :  { %570 = vmatpush3.msra.mxu1 %v745_v1  ;;  %557 = vmatprep.subr.mxu0 %v747_v2  ;;  %v765_v7 = vld [vmem:[#allocation2 + $0x20] sm:$0xff]  ;;  %v44_v9 = vld [vmem:[#allocation5 + $0x8] sm:$0xff]  ;;  %v777_v11 = vld [vmem:[#allocation2 + $0x78] sm:$0xff]  ;;  %p658_p10 = scmp.ne.s32.totalorder %s491_s1, %s657_s26  ;;  %p662_p11 = scmp.lt.s32.totalorder %s491_s1, %s491_s1 }
  0x21   :  { %571 = vmatprep.subr.mxu1 %v751_v3  ;;  %558 = vmatpush3.msra.mxu0 %v747_v2  ;;  %v43_v8 = vld [vmem:[#allocation5] sm:$0xff]  ;;  %v783_v12 = vld [vmem:[#allocation2 + $0x50] sm:$0xff]  ;;  %v46_v15 = vld [vmem:[#allocation5 + $0x18] sm:$0xff]  ;;  %p663_p12 = scmp.lt.s32.totalorder %s657_s26, %s657_s26 }
  0x22   :  { %572 = vmatpush3.msra.mxu1 %v751_v3  ;;  %559 = vmatprep.subr.mxu0 %v755_v4  ;;  %v785_v13 = vld [vmem:[#allocation2 + $0x70] sm:$0xff]  ;;  %v795_v16 = vld [vmem:[#allocation2 + $0x48] sm:$0xff]  ;;  %v803_v18 = vld [vmem:[#allocation2 + $0x40] sm:$0xff] }
  0x23   :  { %573 = vmatprep.subr.mxu1 %v757_v5  ;;  %560 = vmatpush3.msra.mxu0 %v755_v4  ;;  %v45_v14 = vld [vmem:[#allocation5 + $0x10] sm:$0xff]  ;;  %v797_v17 = vld [vmem:[#allocation2 + $0x68] sm:$0xff]  ;;  %v805_v19 = vld [vmem:[#allocation2 + $0x60] sm:$0xff]  ;;  %p664_p13 = por %p663_p12, %p662_p11 }
  0x24   :  { %574 = vmatpush3.msra.mxu1 %v757_v5  ;;  %561 = vmatprep.subr.mxu0 %v763_v6 }
  0x25   :  { %575 = vmatprep.subr.mxu1 %v765_v7  ;;  %562 = vmatpush3.msra.mxu0 %v763_v6  ;;  %p665_p0 = pnand %p664_p13, %p658_p10 }
  0x26   :  { %563 = vmatprep.mubr.msk.f32.mxu0 %vm51_vm0, %v43_v8  ;;  %576 = vmatpush3.msra.mxu1 %v765_v7 }
  0x27   :  { %577 = vmatprep.mubr.msk.f32.mxu1 %vm51_vm0, %v43_v8  ;;  %564 = vmatmul.mubr.msk.f32.vlgmr.msra.gmra.mxu0 %vm51_vm0, %v44_v9 }
  0x28   :  { %578 = vmatmul.mubr.msk.f32.vlgmr.msra.gmra.mxu1 %vm51_vm0, %v44_v9  ;;  %583 = vmatprep.subr.mxu0 %v775_v10 }
  0x29   :  { %597 = vmatprep.subr.mxu1 %v777_v11  ;;  %584 = vmatpush3.msra.mxu0 %v775_v10 }
  0x2a   :  { %598 = vmatpush3.msra.mxu1 %v777_v11  ;;  %585 = vmatprep.subr.mxu0 %v783_v12 }
  0x2b   :  { %599 = vmatprep.subr.mxu1 %v785_v13  ;;  %566 = vmatprep.mubr.msk.f32.mxu0 %vm51_vm0, %v45_v14 }
  0x2c   :  { %580 = vmatprep.mubr.msk.f32.mxu1 %vm51_vm0, %v45_v14  ;;  %586 = vmatpush3.msra.mxu0 %v783_v12 }
  0x2d   :  { %600 = vmatpush3.msra.mxu1 %v785_v13  ;;  %567 = vmatmul.mubr.msk.f32.gmra.mxu0 %vm51_vm0, %v46_v15 }
  0x2e   :  { %581 = vmatmul.mubr.msk.f32.gmra.mxu1 %vm51_vm0, %v46_v15  ;;  %587 = vmatprep.subr.mxu0 %v795_v16 }
  0x2f   :  { %601 = vmatprep.subr.mxu1 %v797_v17  ;;  %588 = vmatpush3.msra.mxu0 %v795_v16 }
  0x30   :  { %602 = vmatpush3.msra.mxu1 %v797_v17  ;;  %589 = vmatprep.subr.mxu0 %v803_v18 }
  0x31   :  { %603 = vmatprep.subr.mxu1 %v805_v19  ;;  %590 = vmatpush3.msra.mxu0 %v803_v18 }
  0x32   :  { %591 = vmatprep.mubr.msk.f32.mxu0 %vm51_vm0, %v43_v8  ;;  %604 = vmatpush3.msra.mxu1 %v805_v19 }
  0x33   :  { %605 = vmatprep.mubr.msk.f32.mxu1 %vm51_vm0, %v43_v8  ;;  %592 = vmatmul.mubr.msk.f32.vlgmr.msra.gmra.mxu0 %vm51_vm0, %v44_v9 }
  0x34   :  { %606 = vmatmul.mubr.msk.f32.vlgmr.msra.gmra.mxu1 %vm51_vm0, %v44_v9  ;;  %594 = vmatprep.mubr.msk.f32.mxu0 %vm51_vm0, %v45_v14 }
  0x35   :  { %608 = vmatprep.mubr.msk.f32.mxu1 %vm51_vm0, %v45_v14 }
  0x37   :  { %595 = vmatmul.mubr.msk.f32.gmra.mxu0 %vm51_vm0, %v46_v15 }
  0x38   :  { %609 = vmatmul.mubr.msk.f32.gmra.mxu1 %vm51_vm0, %v46_v15 }
  0xe7   :  { %v565_v20 = vpop.f32.mrf.mxu0 }
  0xe8   :  { %v579_v21 = vpop.f32.mrf.mxu1  ;;  %150 = vst [vmem:[#allocation8 + $0x8] sm:$0xff] %v565_v20  ;;  %v154_v22 = vsub.f32 %v755_v4, %v565_v20 }
  0xe9   :  { %253 = vst [vmem:[#allocation8 + $0x28] sm:$0xff] %v579_v21  ;;  %v257_v23 = vsub.f32 %v757_v5, %v579_v21  ;;  %v130_v24 = vpop.f32.mrf.mxu0 }
  0xea   :  { %v232_v25 = vpop.f32.mrf.mxu1  ;;  %158 = vst [vmem:[#allocation7 + $0x8] sm:$0xff] %v154_v22  ;;  %149 = vst [vmem:[#allocation8] sm:$0xff] %v130_v24  ;;  %v153_v26 = vsub.f32 %v763_v6, %v130_v24 }
  0xeb   :  { %262 = vst [vmem:[#allocation7 + $0x28] sm:$0xff] %v257_v23  ;;  %252 = vst [vmem:[#allocation8 + $0x20] sm:$0xff] %v232_v25  ;;  %v256_v27 = vsub.f32 %v765_v7, %v232_v25 }
  0xec   :  { %157 = vst [vmem:[#allocation7] sm:$0xff] %v153_v26 }
  0xed   :  { %261 = vst [vmem:[#allocation7 + $0x20] sm:$0xff] %v256_v27  ;;  %v568_v28 = vpop.f32.mrf.mxu0 }
  0xee   :  { %v582_v29 = vpop.f32.mrf.mxu1  ;;  %152 = vst [vmem:[#allocation8 + $0x18] sm:$0xff] %v568_v28  ;;  %v156_v30 = vsub.f32 %v743_v0, %v568_v28 }
  0xef   :  { %255 = vst [vmem:[#allocation8 + $0x38] sm:$0xff] %v582_v29  ;;  %v259_v31 = vsub.f32 %v745_v1, %v582_v29  ;;  %v140_v32 = vpop.f32.mrf.mxu0 }
  0xf0   :  { %v242_v33 = vpop.f32.mrf.mxu1  ;;  %160 = vst [vmem:[#allocation7 + $0x18] sm:$0xff] %v156_v30  ;;  %151 = vst [vmem:[#allocation8 + $0x10] sm:$0xff] %v140_v32  ;;  %v155_v34 = vsub.f32 %v747_v2, %v140_v32 }
  0xf1   :  { %264 = vst [vmem:[#allocation7 + $0x38] sm:$0xff] %v259_v31  ;;  %254 = vst [vmem:[#allocation8 + $0x30] sm:$0xff] %v242_v33  ;;  %v258_v35 = vsub.f32 %v751_v3, %v242_v33 }
  0xf2   :  { %159 = vst [vmem:[#allocation7 + $0x10] sm:$0xff] %v155_v34 }
  0xf3   :  { %263 = vst [vmem:[#allocation7 + $0x30] sm:$0xff] %v258_v35  ;;  %v593_v36 = vpop.f32.mrf.mxu0 }
  0xf4   :  { %v607_v37 = vpop.f32.mrf.mxu1  ;;  %357 = vst [vmem:[#allocation8 + $0x48] sm:$0xff] %v593_v36  ;;  %v361_v38 = vsub.f32 %v795_v16, %v593_v36 }
  0xf5   :  { %461 = vst [vmem:[#allocation8 + $0x68] sm:$0xff] %v607_v37  ;;  %v465_v39 = vsub.f32 %v797_v17, %v607_v37  ;;  %v336_v40 = vpop.f32.mrf.mxu0 }
  0xf6   :  { %v440_v41 = vpop.f32.mrf.mxu1  ;;  %366 = vst [vmem:[#allocation7 + $0x48] sm:$0xff] %v361_v38  ;;  %356 = vst [vmem:[#allocation8 + $0x40] sm:$0xff] %v336_v40  ;;  %v360_v42 = vsub.f32 %v803_v18, %v336_v40 }
  0xf7   :  { %470 = vst [vmem:[#allocation7 + $0x68] sm:$0xff] %v465_v39  ;;  %460 = vst [vmem:[#allocation8 + $0x60] sm:$0xff] %v440_v41  ;;  %v464_v43 = vsub.f32 %v805_v19, %v440_v41  ;;  %v596_v44 = vpop.f32.mrf.mxu0 }
  0xf8   :  { %v610_v45 = vpop.f32.mrf.mxu1  ;;  %365 = vst [vmem:[#allocation7 + $0x40] sm:$0xff] %v360_v42  ;;  %359 = vst [vmem:[#allocation8 + $0x58] sm:$0xff] %v596_v44  ;;  %v363_v46 = vsub.f32 %v775_v10, %v596_v44 }
  0xf9   :  { %469 = vst [vmem:[#allocation7 + $0x60] sm:$0xff] %v464_v43  ;;  %463 = vst [vmem:[#allocation8 + $0x78] sm:$0xff] %v610_v45  ;;  %v467_v47 = vsub.f32 %v777_v11, %v610_v45  ;;  %v346_v48 = vpop.f32.mrf.mxu0 }
  0xfa   :  { %v450_v49 = vpop.f32.mrf.mxu1  ;;  %368 = vst [vmem:[#allocation7 + $0x58] sm:$0xff] %v363_v46  ;;  %358 = vst [vmem:[#allocation8 + $0x50] sm:$0xff] %v346_v48  ;;  %v362_v50 = vsub.f32 %v783_v12, %v346_v48 }
  0xfb   :  { %472 = vst [vmem:[#allocation7 + $0x78] sm:$0xff] %v467_v47  ;;  %462 = vst [vmem:[#allocation8 + $0x70] sm:$0xff] %v450_v49  ;;  %v466_v51 = vsub.f32 %v785_v13, %v450_v49 }
  0xfc   :  { %668 = shalt.err (!%p665_p0)
}
  0xfd   :  { %496 = dma.vmem_to_hbm [thread:$0]  %s491_s1, 2048, %s854_s3, [#allocation9], %s706_s15, %s706_s15, %s707_s16   ;;  %367 = vst [vmem:[#allocation7 + $0x50] sm:$0xff] %v362_v50  ;;  %471 = vst [vmem:[#allocation7 + $0x70] sm:$0xff] %v466_v51 }
  0xfe   :  { %s677_s29 = scalar_lea.vmem %s479_s25, 2048  ;;  %p682_p2 = scmp.lt.s32.totalorder %s479_s25, %s479_s25 }
  0xff   :  { %p678_p1 = scmp.ne.s32.totalorder %s479_s25, %s677_s29  ;;  %p683_p3 = scmp.lt.s32.totalorder %s677_s29, %s677_s29 }
 0x101   :  { %p684_p4 = por %p683_p3, %p682_p2 }
 0x103   :  { %p685_p5 = pnand %p684_p4, %p678_p1 }
 0x105   :  { %688 = shalt.err (!%p685_p5)
}
 0x106   :  { %484 = dma.vmem_to_hbm [thread:$0]  %s479_s25, 2048, %s853_s2, [#allocation4], %s706_s15, %s706_s15, %s707_s16  }
 0x107   :  { %701 = dma.done.wait [#allocation4], 2048  }
 0x108   :  { %702 = vsyncadd [#allocation4], 4294965248 }
 0x109   :  { %703 = dma.done.wait [#allocation9], 2048  }
 0x10a   :  { %704 = vsyncadd [#allocation9], 4294965248 }
 0x10b   :  { %503 = vsyncpa [#allocation3], 1 }
 0x10c   :  { %504 = vsyncpa [#allocation6], 1 }
 0x10d   :  { %505 = vsyncpa [#allocation4], 1 }
 0x10e   :  { %506 = vsyncpa [#allocation9], 1 }

</bundles_post_ra>
